<compile_context>
chip_gen: v6e
topology: v6e:2x2x1
jax: 0.10.0
libtpu: 0.0.40
codegen_flags: <defaults>
</compile_context>

<pallas_src>
import functools
import math

import numpy as np
import jax
import jax.numpy as jnp
from jax.experimental import pallas as pl
from jax.experimental.pallas import tpu as pltpu


def _gelu_exact(x):
    # matches torch.nn.functional.gelu default (erf-based, not tanh approx)
    return 0.5 * x * (1.0 + jax.lax.erf(x * (1.0 / math.sqrt(2.0))))


def _decompose_kernel(xp_ref, dww_ref, dwb_ref,
                      w1_ref, b1_ref, w2_ref, b2_ref,
                      w3_ref, b3_ref, w4_ref, b4_ref,
                      o_ref, *, seq_len, pad_left):
    C = o_ref.shape[1]
    N = o_ref.shape[2]          # N = batch_tile * seq_len (lane axis)
    K = dww_ref.shape[1]

    xp = xp_ref[0]              # (C, N + K - 1) flat, zero-padded, f32
    dww = dww_ref[...]          # (C, K) depthwise weights with BN scale folded
    dwb = dwb_ref[...]          # (C, 1) depthwise bias with BN shift folded

    # within-sequence time index of each flat (batch, time) lane position
    t_idx = jax.lax.broadcasted_iota(jnp.int32, (1, N), 1) % seq_len

    # --- depthwise Conv1d(groups=C, padding='same') + folded BN (VPU, f32) ---
    # K is small & static -> unrolled.  Cross-sequence leakage of the flat
    # batch-on-lanes layout is suppressed with a per-shift validity mask.
    y = jnp.zeros((C, N), jnp.float32)
    for k in range(K):
        shift = k - pad_left
        xk = xp[:, k:k + N]
        if shift != 0:
            valid = jnp.logical_and(t_idx >= -shift, t_idx < seq_len - shift)
            xk = jnp.where(valid, xk, 0.0)
        y = y + dww[:, k:k + 1] * xk
    y = y + dwb
    # TODO(synk): BatchNorm uses inference (running-stats) semantics; training
    # mode batch statistics over (batch, time) are not implemented.

    mm = w1_ref.dtype           # bf16 MXU operands, f32 accumulation

    # --- conv_ffn1 (PWConv, groups=M) as dense block-diagonal matmuls ---
    # TODO(synk): for large M/D switch to grouped per-group dots instead of
    # dense block-diagonal weights (dense wastes FLOPs/VMEM by the group count).
    h = jnp.dot(w1_ref[...], y.astype(mm),
                preferred_element_type=jnp.float32) + b1_ref[...]
    h = _gelu_exact(h)
    z = jnp.dot(w2_ref[...], h.astype(mm),
                preferred_element_type=jnp.float32) + b2_ref[...]

    # --- conv_ffn2 (PWConv, groups=D); the (m d)<->(d m) permutations are
    # already folded into w3/w4/b4 in the wrapper ---
    h = jnp.dot(w3_ref[...], z.astype(mm),
                preferred_element_type=jnp.float32) + b3_ref[...]
    h = _gelu_exact(h)
    z = jnp.dot(w4_ref[...], h.astype(mm),
                preferred_element_type=jnp.float32) + b4_ref[...]

    # --- residual with the original (un-convolved) input ---
    o_ref[0] = (z + xp[:, pad_left:pad_left + N]).astype(o_ref.dtype)


def _block_diag(wg):
    """(G, out_per_group, in_per_group) grouped weight -> dense block-diagonal."""
    G, og, ig = wg.shape
    full = jnp.zeros((G * og, G * ig), wg.dtype)
    for g in range(G):
        full = full.at[g * og:(g + 1) * og, g * ig:(g + 1) * ig].set(wg[g])
    return full


def init_params(key, M, D, K, r):
    C = M * D
    ks = jax.random.split(key, 14)

    def rnd(k, shape, scale):
        return scale * jax.random.normal(k, shape, jnp.float32)

    return {
        # depthwise conv: torch weight (C, 1, K) -> (C, K); bias (C,)
        "dw_w": rnd(ks[0], (C, K), 0.3),
        "dw_b": rnd(ks[1], (C,), 0.1),
        # BatchNorm1d(C)
        "bn_gamma": 1.0 + rnd(ks[2], (C,), 0.1),
        "bn_beta": rnd(ks[3], (C,), 0.1),
        "bn_mean": rnd(ks[4], (C,), 0.1),
        "bn_var": jax.random.uniform(ks[5], (C,), jnp.float32, 0.5, 1.5),
        # conv_ffn1 = PWConv(M, D, r, one=True): groups = M
        "w1": rnd(ks[6], (M, r * D, D), 0.3),
        "b1": rnd(ks[7], (M, r * D), 0.1),
        "w2": rnd(ks[8], (M, D, r * D), 0.3),
        "b2": rnd(ks[9], (M, D), 0.1),
        # conv_ffn2 = PWConv(M, D, r, one=False): groups = D
        "w3": rnd(ks[10], (D, r * M, M), 0.3),
        "b3": rnd(ks[11], (D, r * M), 0.1),
        "w4": rnd(ks[12], (D, M, r * M), 0.3),
        "b4": rnd(ks[13], (D, M), 0.1),
    }


def decompose_conv_block(x_emb, params, *, kernel_size, r, bn_eps=1e-5,
                         matmul_dtype=jnp.bfloat16):
    B, M, D, T = x_emb.shape
    C = M * D
    rC = r * C
    K = kernel_size
    pad_left = (K - 1) // 2
    pad_right = (K - 1) - pad_left

    # ---- batch tiling: fold batch onto the lane axis so the MXU/store path
    # see N = bt*T lanes per grid step (aim for >= 128 when B*T allows). ----
    target_bt = max(1, pl.cdiv(128, T))
    bt = next(d for d in range(min(B, target_bt), 0, -1) if B % d == 0)
    G = B // bt
    N = bt * T
    Np = N + K - 1

    # 'b m d t -> b (m d) t', then flatten each batch tile time-major onto the
    # lane axis: (G, C, bt*T), zero-padded for the 'same' depthwise conv.
    x = x_emb.astype(jnp.float32).reshape(B, C, T)
    xg = x.reshape(G, bt, C, T).transpose(0, 2, 1, 3).reshape(G, C, N)
    xp = jnp.pad(xg, ((0, 0), (0, 0), (pad_left, pad_right)))

    # ---- wrapper-side weight folding (one-time) ----
    # BatchNorm (eval) affine folded into the depthwise conv.
    s = params["bn_gamma"] / jnp.sqrt(params["bn_var"] + bn_eps)      # (C,)
    dww = (params["dw_w"] * s[:, None]).astype(jnp.float32)           # (C, K)
    dwb = (params["dw_b"] * s + params["bn_beta"]
           - params["bn_mean"] * s).reshape(C, 1).astype(jnp.float32)

    # grouped 1x1 convs as dense block-diagonal matrices (fine for small M/D)
    w1 = _block_diag(params["w1"]); b1 = params["b1"].reshape(rC, 1)
    w2 = _block_diag(params["w2"]); b2 = params["b2"].reshape(C, 1)
    w3 = _block_diag(params["w3"]); b3 = params["b3"].reshape(rC, 1)
    w4 = _block_diag(params["w4"]); b4 = params["b4"].reshape(C, 1)

    # fold the (m d)->(d m) / (d m)->(m d) channel permutations into FFN2:
    #   z = P @ y  with z[d*M+m] = y[m*D+d]   =>  w3' = W3 @ P  = W3[:, inv]
    #   out = P^T @ (W4 @ h + b4)             =>  w4' = W4[inv, :], b4' = b4[inv]
    src = np.arange(C).reshape(M, D).T.reshape(-1)      # z[i] = y[src[i]]
    inv = np.argsort(src)
    w3 = w3[:, inv]
    w4 = w4[inv, :]
    b4 = b4[inv, :]

    weights = (dww, dwb,
               w1.astype(matmul_dtype), b1.astype(jnp.float32),
               w2.astype(matmul_dtype), b2.astype(jnp.float32),
               w3.astype(matmul_dtype), b3.astype(jnp.float32),
               w4.astype(matmul_dtype), b4.astype(jnp.float32))

    # Grid-invariant weights: constant index_map + single buffering (no need
    # to double-buffer inputs that never change across grid steps).
    def _weight_spec(a):
        ndim = a.ndim

        def imap(i):
            return (0,) * ndim

        return pl.BlockSpec(a.shape, imap, pipeline_mode=pl.Buffered(1))

    kernel = functools.partial(_decompose_kernel, seq_len=T, pad_left=pad_left)

    out = pl.pallas_call(
        kernel,
        out_shape=jax.ShapeDtypeStruct((G, C, N), jnp.float32),
        grid=(G,),
        in_specs=[pl.BlockSpec((1, C, Np), lambda i: (i, 0, 0))]
                 + [_weight_spec(w) for w in weights],
        out_specs=pl.BlockSpec((1, C, N), lambda i: (i, 0, 0)),
        compiler_params=pltpu.CompilerParams(
            dimension_semantics=("parallel",)),
        # NOTE: for large C / T add a time-tile grid axis with a (K-1) halo and
        # set vmem_limit_bytes explicitly (v7x has only 64 MiB physical VMEM).
    )(xp, *weights)

    # (G, C, bt*T) -> (B, C, T) -> 'b (m d) t -> b m d t'
    out = out.reshape(G, C, bt, T).transpose(0, 2, 1, 3).reshape(B, C, T)
    return out.reshape(B, M, D, T)


def _reference(x_emb, params, kernel_size, r, bn_eps=1e-5):
    """Pure-JAX reference with per-group einsums (independent formulation)."""
    B, M, D, T = x_emb.shape
    C = M * D
    K = kernel_size
    x = x_emb.reshape(B, C, T)
    pad_left = (K - 1) // 2
    x_pad = jnp.pad(x, ((0, 0), (0, 0), (pad_left, K - 1 - pad_left)))
    y = jnp.zeros((B, C, T), jnp.float32)
    for k in range(K):
        y = y + params["dw_w"][None, :, k:k + 1] * x_pad[:, :, k:k + T]
    y = y + params["dw_b"][None, :, None]
    scale = params["bn_gamma"] / jnp.sqrt(params["bn_var"] + bn_eps)
    y = (y - params["bn_mean"][None, :, None]) * scale[None, :, None] \
        + params["bn_beta"][None, :, None]
    yg = y.reshape(B, M, D, T)
    h = jnp.einsum('mod,bmdt->bmot', params["w1"], yg) + params["b1"][None, :, :, None]
    h = _gelu_exact(h)
    y1 = jnp.einsum('mdo,bmot->bmdt', params["w2"], h) + params["b2"][None, :, :, None]
    z = jnp.transpose(y1, (0, 2, 1, 3))              # b d m t
    h = jnp.einsum('dom,bdmt->bdot', params["w3"], z) + params["b3"][None, :, :, None]
    h = _gelu_exact(h)
    z2 = jnp.einsum('dmo,bdot->bdmt', params["w4"], h) + params["b4"][None, :, :, None]
    return jnp.transpose(z2, (0, 2, 1, 3)) + x_emb


if __name__ == "__main__":
    M, D, K, r = 4, 4, 3, 2
    B, T = 2, 16

    key = jax.random.PRNGKey(0)
    k_x, k_p = jax.random.split(key)
    x_emb = jax.random.normal(k_x, (B, M, D, T), jnp.float32)
    params = init_params(k_p, M, D, K, r)

    out = decompose_conv_block(x_emb, params, kernel_size=K, r=r)
    out = jax.block_until_ready(out)

    ref = jax.block_until_ready(_reference(x_emb, params, K, r))
    assert out.shape == (B, M, D, T)
    # kernel uses bf16 MXU operands (f32 accumulation); reference runs at
    # default XLA matmul precision -> tolerance loosened accordingly.
    np.testing.assert_allclose(np.asarray(out), np.asarray(ref),
                               rtol=2e-2, atol=2e-2)
    print("KERNEL_OK")
</pallas_src>

<mosaic_0001>
module attributes {stable_mosaic.version = 11 : i64} {
  func.func @_decompose_kernel(%arg0: i32, %arg1: memref<1x16x34xf32, #tpu.memory_space<vmem>>, %arg2: memref<16x3xf32, #tpu.memory_space<vmem>>, %arg3: memref<16x1xf32, #tpu.memory_space<vmem>>, %arg4: memref<32x16xbf16, #tpu.memory_space<vmem>>, %arg5: memref<32x1xf32, #tpu.memory_space<vmem>>, %arg6: memref<16x32xbf16, #tpu.memory_space<vmem>>, %arg7: memref<16x1xf32, #tpu.memory_space<vmem>>, %arg8: memref<32x16xbf16, #tpu.memory_space<vmem>>, %arg9: memref<32x1xf32, #tpu.memory_space<vmem>>, %arg10: memref<16x32xbf16, #tpu.memory_space<vmem>>, %arg11: memref<16x1xf32, #tpu.memory_space<vmem>>, %arg12: memref<1x16x32xf32, #tpu.memory_space<vmem>>) attributes {dimension_semantics = [#tpu.dimension_semantics<parallel>], iteration_bounds = array<i64: 1>, scalar_prefetch = 0 : i64, scratch_operands = 0 : i64, tpu.core_type = #tpu.core_type<tc>, window_params = [{transform_indices = @transform_0, window_bounds = array<i64: 1, 16, 34>}, {pipeline_mode = #tpu.pipeline_mode<synchronous>, transform_indices = @transform_1, window_bounds = array<i64: 16, 3>}, {pipeline_mode = #tpu.pipeline_mode<synchronous>, transform_indices = @transform_2, window_bounds = array<i64: 16, 1>}, {pipeline_mode = #tpu.pipeline_mode<synchronous>, transform_indices = @transform_3, window_bounds = array<i64: 32, 16>}, {pipeline_mode = #tpu.pipeline_mode<synchronous>, transform_indices = @transform_4, window_bounds = array<i64: 32, 1>}, {pipeline_mode = #tpu.pipeline_mode<synchronous>, transform_indices = @transform_5, window_bounds = array<i64: 16, 32>}, {pipeline_mode = #tpu.pipeline_mode<synchronous>, transform_indices = @transform_6, window_bounds = array<i64: 16, 1>}, {pipeline_mode = #tpu.pipeline_mode<synchronous>, transform_indices = @transform_7, window_bounds = array<i64: 32, 16>}, {pipeline_mode = #tpu.pipeline_mode<synchronous>, transform_indices = @transform_8, window_bounds = array<i64: 32, 1>}, {pipeline_mode = #tpu.pipeline_mode<synchronous>, transform_indices = @transform_9, window_bounds = array<i64: 16, 32>}, {pipeline_mode = #tpu.pipeline_mode<synchronous>, transform_indices = @transform_10, window_bounds = array<i64: 16, 1>}, {transform_indices = @transform_11, window_bounds = array<i64: 1, 16, 32>}]} {
    %c0 = arith.constant 0 : index
    %c0_0 = arith.constant 0 : index
    %c0_1 = arith.constant 0 : index
    %0 = vector.load %arg1[%c0, %c0_0, %c0_1] : memref<1x16x34xf32, #tpu.memory_space<vmem>>, vector<1x16x34xf32>
    %1 = vector.shape_cast %0 : vector<1x16x34xf32> to vector<16x34xf32>
    %c0_2 = arith.constant 0 : index
    %c0_3 = arith.constant 0 : index
    %2 = vector.load %arg2[%c0_2, %c0_3] : memref<16x3xf32, #tpu.memory_space<vmem>>, vector<16x3xf32>
    %c0_4 = arith.constant 0 : index
    %c0_5 = arith.constant 0 : index
    %3 = vector.load %arg3[%c0_4, %c0_5] : memref<16x1xf32, #tpu.memory_space<vmem>>, vector<16x1xf32>
    %4 = tpu.iota {dimensions = array<i32: 1>} : vector<1x32xi32>
    %c16_i32 = arith.constant 16 : i32
    %c0_i32 = arith.constant 0 : i32
    %5 = arith.cmpi eq, %c16_i32, %c0_i32 : i32
    %c1_i32 = arith.constant 1 : i32
    %6 = arith.select %5, %c1_i32, %c16_i32 : i32
    %7 = vector.broadcast %6 : i32 to vector<1x32xi32>
    %8 = arith.remsi %4, %7 : vector<1x32xi32>
    %c0_i32_6 = arith.constant 0 : i32
    %9 = vector.broadcast %c0_i32_6 : i32 to vector<1x32xi32>
    %10 = arith.cmpi ne, %8, %9 : vector<1x32xi32>
    %c0_i32_7 = arith.constant 0 : i32
    %11 = vector.broadcast %c0_i32_7 : i32 to vector<1x32xi32>
    %12 = arith.cmpi slt, %8, %11 : vector<1x32xi32>
    %c0_i32_8 = arith.constant 0 : i32
    %13 = arith.cmpi slt, %6, %c0_i32_8 : i32
    %14 = vector.broadcast %13 : i1 to vector<1x32xi1>
    %15 = vector.broadcast %14 : vector<1x32xi1> to vector<1x32xi1>
    %16 = arith.xori %12, %15 : vector<1x32xi1>
    %17 = arith.andi %16, %10 : vector<1x32xi1>
    %18 = vector.broadcast %6 : i32 to vector<1x32xi32>
    %19 = arith.addi %8, %18 : vector<1x32xi32>
    %20 = arith.select %17, %19, %8 : vector<1x32xi1>, vector<1x32xi32>
    %cst = arith.constant 0.000000e+00 : f32
    %21 = vector.broadcast %cst : f32 to vector<16x32xf32>
    %22 = vector.extract_strided_slice %1 {offsets = [0, 0], sizes = [16, 32], strides = [1, 1]} : vector<16x34xf32> to vector<16x32xf32>
    %c1_i32_9 = arith.constant 1 : i32
    %23 = vector.broadcast %c1_i32_9 : i32 to vector<1x32xi32>
    %24 = arith.cmpi sge, %20, %23 : vector<1x32xi32>
    %c17_i32 = arith.constant 17 : i32
    %25 = vector.broadcast %c17_i32 : i32 to vector<1x32xi32>
    %26 = arith.cmpi slt, %20, %25 : vector<1x32xi32>
    %27 = arith.andi %24, %26 : vector<1x32xi1>
    %cst_10 = arith.constant 0.000000e+00 : f32
    %28 = vector.shape_cast %27 : vector<1x32xi1> to vector<1x32xi1>
    %29 = vector.broadcast %28 : vector<1x32xi1> to vector<16x32xi1>
    %30 = vector.broadcast %cst_10 : f32 to vector<16x32xf32>
    %31 = arith.select %29, %22, %30 : vector<16x32xi1>, vector<16x32xf32>
    %32 = vector.extract_strided_slice %2 {offsets = [0, 0], sizes = [16, 1], strides = [1, 1]} : vector<16x3xf32> to vector<16x1xf32>
    %33 = vector.broadcast %32 : vector<16x1xf32> to vector<16x32xf32>
    %34 = arith.mulf %33, %31 : vector<16x32xf32>
    %35 = arith.addf %21, %34 : vector<16x32xf32>
    %36 = vector.extract_strided_slice %1 {offsets = [0, 1], sizes = [16, 32], strides = [1, 1]} : vector<16x34xf32> to vector<16x32xf32>
    %37 = vector.extract_strided_slice %2 {offsets = [0, 1], sizes = [16, 1], strides = [1, 1]} : vector<16x3xf32> to vector<16x1xf32>
    %38 = vector.broadcast %37 : vector<16x1xf32> to vector<16x32xf32>
    %39 = arith.mulf %38, %36 : vector<16x32xf32>
    %40 = arith.addf %35, %39 : vector<16x32xf32>
    %41 = vector.extract_strided_slice %1 {offsets = [0, 2], sizes = [16, 32], strides = [1, 1]} : vector<16x34xf32> to vector<16x32xf32>
    %c-1_i32 = arith.constant -1 : i32
    %42 = vector.broadcast %c-1_i32 : i32 to vector<1x32xi32>
    %43 = arith.cmpi sge, %20, %42 : vector<1x32xi32>
    %c15_i32 = arith.constant 15 : i32
    %44 = vector.broadcast %c15_i32 : i32 to vector<1x32xi32>
    %45 = arith.cmpi slt, %20, %44 : vector<1x32xi32>
    %46 = arith.andi %43, %45 : vector<1x32xi1>
    %cst_11 = arith.constant 0.000000e+00 : f32
    %47 = vector.shape_cast %46 : vector<1x32xi1> to vector<1x32xi1>
    %48 = vector.broadcast %47 : vector<1x32xi1> to vector<16x32xi1>
    %49 = vector.broadcast %cst_11 : f32 to vector<16x32xf32>
    %50 = arith.select %48, %41, %49 : vector<16x32xi1>, vector<16x32xf32>
    %51 = vector.extract_strided_slice %2 {offsets = [0, 2], sizes = [16, 1], strides = [1, 1]} : vector<16x3xf32> to vector<16x1xf32>
    %52 = vector.broadcast %51 : vector<16x1xf32> to vector<16x32xf32>
    %53 = arith.mulf %52, %50 : vector<16x32xf32>
    %54 = arith.addf %40, %53 : vector<16x32xf32>
    %55 = vector.broadcast %3 : vector<16x1xf32> to vector<16x32xf32>
    %56 = arith.addf %54, %55 : vector<16x32xf32>
    %c0_12 = arith.constant 0 : index
    %c0_13 = arith.constant 0 : index
    %57 = vector.load %arg4[%c0_12, %c0_13] : memref<32x16xbf16, #tpu.memory_space<vmem>>, vector<32x16xbf16>
    %58 = arith.truncf %56 : vector<16x32xf32> to vector<16x32xbf16>
    %cst_14 = arith.constant dense<0.000000e+00> : vector<32x32xf32>
    %59 = tpu.matmul %57, %58, %cst_14 {dimension_numbers = #tpu.dot_dimension_numbers<[1], [0], [0], [1], [0, 0, 1, 1], [], []>} : vector<32x16xbf16>, vector<16x32xbf16>, vector<32x32xf32> -> vector<32x32xf32>
    %c0_15 = arith.constant 0 : index
    %c0_16 = arith.constant 0 : index
    %60 = vector.load %arg5[%c0_15, %c0_16] : memref<32x1xf32, #tpu.memory_space<vmem>>, vector<32x1xf32>
    %61 = vector.broadcast %60 : vector<32x1xf32> to vector<32x32xf32>
    %62 = arith.addf %59, %61 : vector<32x32xf32>
    %cst_17 = arith.constant 5.000000e-01 : f32
    %63 = vector.broadcast %cst_17 : f32 to vector<32x32xf32>
    %64 = arith.mulf %63, %62 : vector<32x32xf32>
    %cst_18 = arith.constant 0.707106769 : f32
    %65 = vector.broadcast %cst_18 : f32 to vector<32x32xf32>
    %66 = arith.mulf %62, %65 : vector<32x32xf32>
    %67 = math.erf %66 : vector<32x32xf32>
    %cst_19 = arith.constant 1.000000e+00 : f32
    %68 = vector.broadcast %cst_19 : f32 to vector<32x32xf32>
    %69 = arith.addf %68, %67 : vector<32x32xf32>
    %70 = arith.mulf %64, %69 : vector<32x32xf32>
    %c0_20 = arith.constant 0 : index
    %c0_21 = arith.constant 0 : index
    %71 = vector.load %arg6[%c0_20, %c0_21] : memref<16x32xbf16, #tpu.memory_space<vmem>>, vector<16x32xbf16>
    %72 = arith.truncf %70 : vector<32x32xf32> to vector<32x32xbf16>
    %cst_22 = arith.constant dense<0.000000e+00> : vector<16x32xf32>
    %73 = tpu.matmul %71, %72, %cst_22 {dimension_numbers = #tpu.dot_dimension_numbers<[1], [0], [0], [1], [0, 0, 1, 1], [], []>} : vector<16x32xbf16>, vector<32x32xbf16>, vector<16x32xf32> -> vector<16x32xf32>
    %c0_23 = arith.constant 0 : index
    %c0_24 = arith.constant 0 : index
    %74 = vector.load %arg7[%c0_23, %c0_24] : memref<16x1xf32, #tpu.memory_space<vmem>>, vector<16x1xf32>
    %75 = vector.broadcast %74 : vector<16x1xf32> to vector<16x32xf32>
    %76 = arith.addf %73, %75 : vector<16x32xf32>
    %c0_25 = arith.constant 0 : index
    %c0_26 = arith.constant 0 : index
    %77 = vector.load %arg8[%c0_25, %c0_26] : memref<32x16xbf16, #tpu.memory_space<vmem>>, vector<32x16xbf16>
    %78 = arith.truncf %76 : vector<16x32xf32> to vector<16x32xbf16>
    %cst_27 = arith.constant dense<0.000000e+00> : vector<32x32xf32>
    %79 = tpu.matmul %77, %78, %cst_27 {dimension_numbers = #tpu.dot_dimension_numbers<[1], [0], [0], [1], [0, 0, 1, 1], [], []>} : vector<32x16xbf16>, vector<16x32xbf16>, vector<32x32xf32> -> vector<32x32xf32>
    %c0_28 = arith.constant 0 : index
    %c0_29 = arith.constant 0 : index
    %80 = vector.load %arg9[%c0_28, %c0_29] : memref<32x1xf32, #tpu.memory_space<vmem>>, vector<32x1xf32>
    %81 = vector.broadcast %80 : vector<32x1xf32> to vector<32x32xf32>
    %82 = arith.addf %79, %81 : vector<32x32xf32>
    %cst_30 = arith.constant 5.000000e-01 : f32
    %83 = vector.broadcast %cst_30 : f32 to vector<32x32xf32>
    %84 = arith.mulf %83, %82 : vector<32x32xf32>
    %cst_31 = arith.constant 0.707106769 : f32
    %85 = vector.broadcast %cst_31 : f32 to vector<32x32xf32>
    %86 = arith.mulf %82, %85 : vector<32x32xf32>
    %87 = math.erf %86 : vector<32x32xf32>
    %cst_32 = arith.constant 1.000000e+00 : f32
    %88 = vector.broadcast %cst_32 : f32 to vector<32x32xf32>
    %89 = arith.addf %88, %87 : vector<32x32xf32>
    %90 = arith.mulf %84, %89 : vector<32x32xf32>
    %c0_33 = arith.constant 0 : index
    %c0_34 = arith.constant 0 : index
    %91 = vector.load %arg10[%c0_33, %c0_34] : memref<16x32xbf16, #tpu.memory_space<vmem>>, vector<16x32xbf16>
    %92 = arith.truncf %90 : vector<32x32xf32> to vector<32x32xbf16>
    %cst_35 = arith.constant dense<0.000000e+00> : vector<16x32xf32>
    %93 = tpu.matmul %91, %92, %cst_35 {dimension_numbers = #tpu.dot_dimension_numbers<[1], [0], [0], [1], [0, 0, 1, 1], [], []>} : vector<16x32xbf16>, vector<32x32xbf16>, vector<16x32xf32> -> vector<16x32xf32>
    %c0_36 = arith.constant 0 : index
    %c0_37 = arith.constant 0 : index
    %94 = vector.load %arg11[%c0_36, %c0_37] : memref<16x1xf32, #tpu.memory_space<vmem>>, vector<16x1xf32>
    %95 = vector.broadcast %94 : vector<16x1xf32> to vector<16x32xf32>
    %96 = arith.addf %93, %95 : vector<16x32xf32>
    %97 = vector.extract_strided_slice %1 {offsets = [0, 1], sizes = [16, 32], strides = [1, 1]} : vector<16x34xf32> to vector<16x32xf32>
    %98 = arith.addf %96, %97 : vector<16x32xf32>
    %c0_38 = arith.constant 0 : index
    %c0_39 = arith.constant 0 : index
    %c0_40 = arith.constant 0 : index
    %99 = vector.load %arg12[%c0_38, %c0_39, %c0_40] : memref<1x16x32xf32, #tpu.memory_space<vmem>>, vector<1x16x32xf32>
    %100 = vector.shape_cast %99 : vector<1x16x32xf32> to vector<16x32xf32>
    %101 = vector.shape_cast %98 : vector<16x32xf32> to vector<1x16x32xf32>
    tpu.vector_store %arg12[%c0_38, %c0_39, %c0_40], %101 {strides = array<i32>} : memref<1x16x32xf32, #tpu.memory_space<vmem>>, vector<1x16x32xf32>,
    return
  }
  func.func @transform_0(%arg0: i32) -> (i32, i32, i32) {
    %c0_i32 = arith.constant 0 : i32
    %c0_i32_0 = arith.constant 0 : i32
    %c0_i32_1 = arith.constant 0 : i32
    return %arg0, %c0_i32, %c0_i32_0 : i32, i32, i32
  }
  func.func @transform_1(%arg0: i32) -> (i32, i32) {
    %c0_i32 = arith.constant 0 : i32
    %c0_i32_0 = arith.constant 0 : i32
    %c0_i32_1 = arith.constant 0 : i32
    return %c0_i32, %c0_i32_0 : i32, i32
  }
  func.func @transform_2(%arg0: i32) -> (i32, i32) {
    %c0_i32 = arith.constant 0 : i32
    %c0_i32_0 = arith.constant 0 : i32
    %c0_i32_1 = arith.constant 0 : i32
    return %c0_i32, %c0_i32_0 : i32, i32
  }
  func.func @transform_3(%arg0: i32) -> (i32, i32) {
    %c0_i32 = arith.constant 0 : i32
    %c0_i32_0 = arith.constant 0 : i32
    %c0_i32_1 = arith.constant 0 : i32
    return %c0_i32, %c0_i32_0 : i32, i32
  }
  func.func @transform_4(%arg0: i32) -> (i32, i32) {
    %c0_i32 = arith.constant 0 : i32
    %c0_i32_0 = arith.constant 0 : i32
    %c0_i32_1 = arith.constant 0 : i32
    return %c0_i32, %c0_i32_0 : i32, i32
  }
  func.func @transform_5(%arg0: i32) -> (i32, i32) {
    %c0_i32 = arith.constant 0 : i32
    %c0_i32_0 = arith.constant 0 : i32
    %c0_i32_1 = arith.constant 0 : i32
    return %c0_i32, %c0_i32_0 : i32, i32
  }
  func.func @transform_6(%arg0: i32) -> (i32, i32) {
    %c0_i32 = arith.constant 0 : i32
    %c0_i32_0 = arith.constant 0 : i32
    %c0_i32_1 = arith.constant 0 : i32
    return %c0_i32, %c0_i32_0 : i32, i32
  }
  func.func @transform_7(%arg0: i32) -> (i32, i32) {
    %c0_i32 = arith.constant 0 : i32
    %c0_i32_0 = arith.constant 0 : i32
    %c0_i32_1 = arith.constant 0 : i32
    return %c0_i32, %c0_i32_0 : i32, i32
  }
  func.func @transform_8(%arg0: i32) -> (i32, i32) {
    %c0_i32 = arith.constant 0 : i32
    %c0_i32_0 = arith.constant 0 : i32
    %c0_i32_1 = arith.constant 0 : i32
    return %c0_i32, %c0_i32_0 : i32, i32
  }
  func.func @transform_9(%arg0: i32) -> (i32, i32) {
    %c0_i32 = arith.constant 0 : i32
    %c0_i32_0 = arith.constant 0 : i32
    %c0_i32_1 = arith.constant 0 : i32
    return %c0_i32, %c0_i32_0 : i32, i32
  }
  func.func @transform_10(%arg0: i32) -> (i32, i32) {
    %c0_i32 = arith.constant 0 : i32
    %c0_i32_0 = arith.constant 0 : i32
    %c0_i32_1 = arith.constant 0 : i32
    return %c0_i32, %c0_i32_0 : i32, i32
  }
  func.func @transform_11(%arg0: i32) -> (i32, i32, i32) {
    %c0_i32 = arith.constant 0 : i32
    %c0_i32_0 = arith.constant 0 : i32
    %c0_i32_1 = arith.constant 0 : i32
    return %arg0, %c0_i32, %c0_i32_0 : i32, i32, i32
  }
}

</mosaic_0001>

<bundles_post_ra>
// kernel: tpu_custom_call.1
= control target key start
LH: loop header
LB: loop body
LE: loop exit
PB: predicated region body
PF: predicated region fallthrough
CT: control target
= control target key end

     0   :  { %v638_v1 = vmov 1   ;;  %v639_v2 = vmov 0   ;;  %s805_s0 = inlined_call_operand.vmem [shape: f32[1,16,34], index: 0, kind: input, shape index: {}]   ;;  %s806_s1 = inlined_call_operand.vmem [shape: f32[16,3], index: 1, kind: input, shape index: {}]   ;;  %s807_s2 = inlined_call_operand.vmem [shape: f32[16,1], index: 2, kind: input, shape index: {}]   ;;  %s808_s3 = inlined_call_operand.vmem [shape: bf16[32,16], index: 3, kind: input, shape index: {}]   ;;  %s809_s4 = inlined_call_operand.vmem [shape: f32[32,1], index: 4, kind: input, shape index: {}]   ;;  %s810_s5 = inlined_call_operand.vmem [shape: bf16[16,32], index: 5, kind: input, shape index: {}]   ;;  %s811_s6 = inlined_call_operand.vmem [shape: f32[16,1], index: 6, kind: input, shape index: {}]   ;;  %s812_s7 = inlined_call_operand.vmem [shape: bf16[32,16], index: 7, kind: input, shape index: {}]   ;;  %s813_s8 = inlined_call_operand.vmem [shape: f32[32,1], index: 8, kind: input, shape index: {}]   ;;  %s814_s9 = inlined_call_operand.vmem [shape: bf16[16,32], index: 9, kind: input, shape index: {}]   ;;  %s815_s10 = inlined_call_operand.vmem [shape: f32[16,1], index: 10, kind: input, shape index: {}]   ;;  %s816_s11 = inlined_call_operand.hbm [shape: f32[1,16,32], index: 11, kind: output, shape index: {}]  }
   0x1   :  { %v42_v0 = vld [vmem:[%s806_s1] sm:$0xff]  ;;  %588 = vset.pattern.permute.xlu0 %v638_v1  ;;  %589 = vset.pattern.permute.xlu1 %v639_v2  ;;  %v43_v3 = vld [vmem:[%s806_s1 + $0x8] sm:$0xff] }
   0x2   :  { %82 = vperm.xlu0 %588, %v42_v0   ;;  %69 = vperm.xlu1 %589, %v42_v0  }
   0x6   :  { %86 = vperm.xlu0 %588, %v43_v3   ;;  %74 = vperm.xlu1 %589, %v43_v3  }
   0x7   :  { %16 = vsyncpa [#allocation3], 0  ;;  %v640_v4 = vmov 2   ;;  %v717_v5 = vld [vmem:[%s805_s0 + $0x8] sm:$0xff]  ;;  %v40_v6 = vld [vmem:[%s805_s0] sm:$0xff]  ;;  %s641_s25 = smov 126   ;;  %v46_v28 = vlaneseq }
   0x8   :  { %v45_v7 = vld [vmem:[%s807_s2 + $0x8] sm:$0xff]  ;;  %v44_v8 = vld [vmem:[%s807_s2] sm:$0xff]  ;;  %v147_v9 = vld [vmem:[%s809_s4 + $0x10] sm:$0xff]  ;;  %s642_s20 = smov 127   ;;  %vm179_vm0 = vcmask 130048   ;;  %v643_v55 = vmov 0.0  }
   0x9   :  { %v145_v10 = vld [vmem:[%s809_s4] sm:$0xff]  ;;  %v328_v12 = vld [vmem:[%s813_s8 + $0x10] sm:$0xff]  ;;  %v148_v20 = vld [vmem:[%s809_s4 + $0x18] sm:$0xff]  ;;  %v47_v30 = vand.u32 127, %v46_v28  ;;  %556 = vmatprep.subr.bf16.mxu1 %v643_v55  ;;  %vm644_vm3 = vmmov 0   ;;  %vm276_vm4 = vcmask 261120  }
   0xa   :  { %590 = vset.pattern.permute.xlu0 %v640_v4  ;;  %591 = vset.pattern.permute.xlu1 %v640_v4  ;;  %v259_v11 = vld [vmem:[%s811_s6] sm:$0xff]  ;;  %v146_v21 = vld [vmem:[%s809_s4 + $0x8] sm:$0xff]  ;;  %v329_v23 = vld [vmem:[%s813_s8 + $0x18] sm:$0xff]  ;;  %s645_s2 = smov [#allocation2]  }
   0xb   :  { %117 = vperm.xlu0 %590, %v42_v0   ;;  %121 = vperm.xlu1 %591, %v43_v3   ;;  %v326_v13 = vld [vmem:[%s813_s8] sm:$0xff]  ;;  %v260_v22 = vld [vmem:[%s811_s6 + $0x8] sm:$0xff]  ;;  %v52_v31 = vand.u32 15, %v47_v30  ;;  %s515_s17 = sshll.u32 %s645_s2, 4  ;;  %s516_s17 = int_to_ptr.vmem [resolvable:$true] %s515_s17 }
   0xc   :  { %v439_v14 = vld [vmem:[%s815_s10] sm:$0xff]  ;;  %v327_v24 = vld [vmem:[%s813_s8 + $0x8] sm:$0xff]  ;;  %560 = vmatprep.mubr.msk.bf16.mxu1 %vm644_vm3, %v643_v55  ;;  %p621_p1 = scmp.lt.s32.totalorder %s516_s17, %s516_s17 }
   0xd   :  { %v594_v17 = vld [vmem:[%s808_s3] sm:$0xff]   ;;  %v440_v25 = vld [vmem:[%s815_s10 + $0x8] sm:$0xff]  ;;  %vm60_vm1 = vcmp.ge.s32.totalorder %v52_v31, 1  ;;  %vm102_vm2 = vcmp.lt.s32.totalorder %v52_v31, 15 }
   0xe   :  { %552 = vmatprep.mubr.msk.bf16.mxu0 %vm179_vm0, %v594_v17  ;;  %v65_v35 = vsel %vm60_vm1, %v40_v6, 0.0  ;;  %v66_v37 = vsel %vm60_vm1, %v717_v5, 0.0  ;;  %v595_v54 = vld [vmem:[%s808_s3 + $0x8] sm:$0xff]  }
   0xf   :  { %110 = vrot.lane.b32.xlu0 %v717_v5, %s641_s25  ;;  %108 = vrot.lane.b32.xlu1 %v40_v6, %s641_s25 }
  0x10   :  { %593 = vset.pattern.permute.xlu0 %v639_v2  ;;  %592 = vset.pattern.permute.xlu1 %v639_v2 }
  0x13   :  { %135 = vperm.xlu0 %593, %v45_v7   ;;  %130 = vperm.xlu1 %592, %v44_v8  }
  0x17   :  { %161 = vperm.xlu0 %593, %v147_v9  }
  0x1b   :  { %151 = vperm.xlu0 %593, %v145_v10  }
  0x1f   :  { %263 = vperm.xlu0 %593, %v259_v11  }
  0x23   :  { %342 = vperm.xlu0 %593, %v328_v12  }
  0x27   :  { %332 = vperm.xlu0 %593, %v326_v13  }
  0x2b   :  { %443 = vperm.xlu0 %593, %v439_v14  }
  0x2f   :  { %500 = vrot.lane.b32.xlu0 %v40_v6, %s642_s20 }
  0x7d   :  { %v83_v15 = vpop.permute.xlu0 %82  ;;  %v70_v26 = vpop.permute.xlu1 %69 }
  0x7e   :  { %v89_v16 = vmul.f32 %v83_v15, %v40_v6  ;;  %v77_v36 = vmul.f32 %v70_v26, %v65_v35  ;;  %v596_v26 = vld [vmem:[%s810_s5] sm:$0xff]  }
  0x80   :  { %93 = vrot.lane.b32.xlu1 %v89_v16, %s642_s20 }
  0x81   :  { %v87_v18 = vpop.permute.xlu0 %86  ;;  %v75_v27 = vpop.permute.xlu1 %74 }
  0x82   :  { %v90_v19 = vmul.f32 %v87_v18, %v717_v5  ;;  %v78_v43 = vmul.f32 %v75_v27, %v66_v37  ;;  %v597_v27 = vld [vmem:[%s812_s7] sm:$0xff]   ;;  %v598_v37 = vld [vmem:[%s812_s7 + $0x8] sm:$0xff]  }
  0x84   :  { %95 = vrot.lane.b32.xlu1 %v90_v19, %s642_s20 }
  0x86   :  { %v122_v29 = vpop.permute.xlu1 %121  ;;  %v118_v34 = vpop.permute.xlu0 %117 }
  0x88   :  { %166 = vperm.xlu1 %592, %v148_v20  }
  0x8a   :  { %v109_v32 = vpop.permute.xlu1 %108  ;;  %v111_v40 = vpop.permute.xlu0 %110 }
  0x8b   :  { %v114_v38 = vsel %vm102_vm2, %v109_v32, 0.0  ;;  %v115_v42 = vsel %vm102_vm2, %v111_v40, 0.0 }
  0x8c   :  { %156 = vperm.xlu1 %592, %v146_v21   ;;  %v124_v44 = vmul.f32 %v118_v34, %v114_v38  ;;  %v125_v46 = vmul.f32 %v122_v29, %v115_v42 }
  0x8e   :  { %v131_v33 = vpop.permute.xlu1 %130  ;;  %v136_v50 = vpop.permute.xlu0 %135 }
  0x90   :  { %268 = vperm.xlu1 %592, %v260_v22  }
  0x92   :  { %v162_v56 = vpop.permute.xlu0 %161 }
  0x94   :  { %347 = vperm.xlu1 %592, %v329_v23  }
  0x96   :  { %v152_v60 = vpop.permute.xlu0 %151 }
  0x98   :  { %337 = vperm.xlu1 %592, %v327_v24  }
  0x9a   :  { %v264_v30 = vpop.permute.xlu0 %263 }
  0x9c   :  { %448 = vperm.xlu1 %592, %v440_v25  }
  0x9e   :  { %v343_v38 = vpop.permute.xlu0 %342 }
  0xa0   :  { %502 = vrot.lane.b32.xlu1 %v717_v5, %s642_s20 }
  0xa2   :  { %v333_v42 = vpop.permute.xlu0 %332 }
  0xf2   :  { %v94_v39 = vpop.permute.xlu1 %93 }
  0xf3   :  { %v99_v41 = vadd.f32 %v94_v39, %v77_v36 }
  0xf5   :  { %v126_v47 = vadd.f32 %v124_v44, %v99_v41 }
  0xf6   :  { %v96_v45 = vpop.permute.xlu1 %95 }
  0xf7   :  { %v100_v48 = vadd.f32 %v96_v45, %v78_v43  ;;  %v138_v51 = vadd.f32 %v131_v33, %v126_v47 }
  0xf9   :  { %v127_v49 = vadd.f32 %v125_v46, %v100_v48 }
  0xfb   :  { %v139_v52 = vadd.f32 %v136_v50, %v127_v49 }
  0xfd   :  { %v144_v53 = vpack.c.bf16 %v139_v52, %v138_v51 }
  0xff   :  { %550 = vmatprep.subr.bf16.mxu0 %v144_v53 }
 0x100   :  { %551 = vmatpush3.bf16.msra.mxu0 %v144_v53 }
 0x103   :  { %553 = vmatmul.mubr.msk.bf16.vlgmr.msra.gmra.mxu0 %vm179_vm0, %v595_v54  ;;  %v167_v57 = vpop.permute.xlu1 %166 }
 0x104   :  { %566 = vmatprep.mubr.msk.bf16.mxu0 %vm179_vm0, %v597_v27 }
 0x107   :  { %v157_v3 = vpop.permute.xlu1 %156 }
 0x10b   :  { %v269_v31 = vpop.permute.xlu1 %268 }
 0x10f   :  { %v348_v39 = vpop.permute.xlu1 %347 }
 0x113   :  { %v338_v49 = vpop.permute.xlu1 %337 }
 0x1c3   :  { %v554_v58 = vpop.f32.mrf.mxu0 }
 0x1c4   :  { %v229_v59 = vadd.f32 %v554_v58, %v162_v56 }
 0x1c5   :  { %v220_v61 = vpop.f32.mrf.mxu0 }
 0x1c6   :  { %v241_v62 = vmul.f32 0.70710677, %v229_v59  ;;  %v221_v63 = vadd.f32 %v220_v61, %v152_v60  ;;  %v237_v12 = vmul.f32 0.5, %v229_v59 }
 0x1c7   :  { %v555_v0 = vpop.f32.mrf.mxu0 }
 0x1c8   :  { %600 = verf.f32 %v241_v62  ;;  %v239_v1 = vmul.f32 0.70710677, %v221_v63  ;;  %v232_v2 = vadd.f32 %v555_v0, %v167_v57  ;;  %v235_v21 = vmul.f32 0.5, %v221_v63 }
 0x1c9   :  { %v223_v4 = vpop.f32.mrf.mxu0 }
 0x1ca   :  { %v242_v5 = vmul.f32 0.70710677, %v232_v2  ;;  %v224_v6 = vadd.f32 %v223_v4, %v157_v3  ;;  %602 = verf.f32 %v239_v1  ;;  %v238_v13 = vmul.f32 0.5, %v232_v2 }
 0x1cc   :  { %604 = verf.f32 %v242_v5  ;;  %v240_v7 = vmul.f32 0.70710677, %v224_v6  ;;  %v236_v16 = vmul.f32 0.5, %v224_v6 }
 0x1ce   :  { %606 = verf.f32 %v240_v7 }
 0x1d5   :  { %v601_v8 = vpop.eup %600 }
 0x1d6   :  { %v249_v10 = vadd.f32 1.0, %v601_v8 }
 0x1d7   :  { %v603_v9 = vpop.eup %602 }
 0x1d8   :  { %v247_v17 = vadd.f32 1.0, %v603_v9  ;;  %v253_v19 = vmul.f32 %v249_v10, %v237_v12  ;;  %v599_v9 = vld [vmem:[%s814_s9] sm:$0xff]   ;;  %v444_v10 = vpop.permute.xlu0 %443  ;;  %s616_s9 = scalar_lea.vmem %s516_s17, 256 }
 0x1d9   :  { %v605_v11 = vpop.eup %604  ;;  %p617_p0 = scmp.ne.s32.totalorder %s516_s17, %s616_s9  ;;  %p622_p2 = scmp.lt.s32.totalorder %s616_s9, %s616_s9 }
 0x1da   :  { %v250_v14 = vadd.f32 1.0, %v605_v11  ;;  %v251_v24 = vmul.f32 %v247_v17, %v235_v21  ;;  %v449_v11 = vpop.permute.xlu1 %448 }
 0x1db   :  { %v607_v15 = vpop.eup %606  ;;  %p623_p3 = por %p622_p2, %p621_p1 }
 0x1dc   :  { %v248_v18 = vadd.f32 1.0, %v607_v15  ;;  %v254_v20 = vmul.f32 %v250_v14, %v238_v13  ;;  %v501_v13 = vpop.permute.xlu0 %500 }
 0x1dd   :  { %p624_p4 = pnand %p623_p3, %p617_p0 }
 0x1de   :  { %v252_v22 = vmul.f32 %v248_v18, %v236_v16  ;;  %v258_v23 = vpack.c.bf16 %v254_v20, %v253_v19  ;;  %v503_v18 = vpop.permute.xlu1 %502 }
 0x1e0   :  { %557 = vmatpush3.bf16.msra.mxu1 %v258_v23  ;;  %v257_v25 = vpack.c.bf16 %v252_v22, %v251_v24 }
 0x1e1   :  { %558 = vmatprep.subr.bf16.mxu1 %v643_v55 }
 0x1e4   :  { %559 = vmatpush3.bf16.msra.mxu1 %v257_v25 }
 0x1e5   :  { %570 = vmatprep.subr.bf16.mxu1 %v643_v55 }
 0x1e7   :  { %561 = vmatmul.mubr.msk.bf16.vlgmr.msra.gmra.mxu1 %vm276_vm4, %v596_v26 }
 0x1e8   :  { %574 = vmatprep.mubr.msk.bf16.mxu1 %vm644_vm3, %v643_v55 }
 0x2a7   :  { %v314_v28 = vpop.f32.mrf.mxu1 }
 0x2a8   :  { %v315_v33 = vadd.f32 %v314_v28, %v264_v30 }
 0x2a9   :  { %v562_v29 = vpop.f32.mrf.mxu1 }
 0x2ab   :  { %v317_v32 = vpop.f32.mrf.mxu1 }
 0x2ac   :  { %v318_v34 = vadd.f32 %v317_v32, %v269_v31 }
 0x2ad   :  { %v563_v35 = vpop.f32.mrf.mxu1 }
 0x2ae   :  { %v325_v36 = vpack.c.bf16 %v318_v34, %v315_v33 }
 0x2b0   :  { %564 = vmatprep.subr.bf16.mxu0 %v325_v36 }
 0x2b1   :  { %565 = vmatpush3.bf16.msra.mxu0 %v325_v36 }
 0x2b4   :  { %567 = vmatmul.mubr.msk.bf16.vlgmr.msra.gmra.mxu0 %vm179_vm0, %v598_v37 }
 0x374   :  { %v568_v40 = vpop.f32.mrf.mxu0 }
 0x375   :  { %v409_v41 = vadd.f32 %v568_v40, %v343_v38 }
 0x376   :  { %v400_v43 = vpop.f32.mrf.mxu0 }
 0x377   :  { %v421_v44 = vmul.f32 0.70710677, %v409_v41  ;;  %v401_v45 = vadd.f32 %v400_v43, %v333_v42  ;;  %v417_v59 = vmul.f32 0.5, %v409_v41 }
 0x378   :  { %v569_v46 = vpop.f32.mrf.mxu0 }
 0x379   :  { %608 = verf.f32 %v421_v44  ;;  %v419_v47 = vmul.f32 0.70710677, %v401_v45  ;;  %v412_v48 = vadd.f32 %v569_v46, %v348_v39  ;;  %v415_v4 = vmul.f32 0.5, %v401_v45 }
 0x37a   :  { %v403_v50 = vpop.f32.mrf.mxu0 }
 0x37b   :  { %v422_v51 = vmul.f32 0.70710677, %v412_v48  ;;  %v404_v52 = vadd.f32 %v403_v50, %v338_v49  ;;  %610 = verf.f32 %v419_v47  ;;  %v418_v60 = vmul.f32 0.5, %v412_v48 }
 0x37d   :  { %612 = verf.f32 %v422_v51  ;;  %v420_v53 = vmul.f32 0.70710677, %v404_v52  ;;  %v416_v63 = vmul.f32 0.5, %v404_v52 }
 0x37f   :  { %614 = verf.f32 %v420_v53 }
 0x386   :  { %v609_v54 = vpop.eup %608 }
 0x387   :  { %v429_v57 = vadd.f32 1.0, %v609_v54 }
 0x388   :  { %v611_v56 = vpop.eup %610 }
 0x389   :  { %v433_v0 = vmul.f32 %v429_v57, %v417_v59  ;;  %v427_v1 = vadd.f32 1.0, %v611_v56 }
 0x38a   :  { %v613_v58 = vpop.eup %612 }
 0x38b   :  { %v430_v61 = vadd.f32 1.0, %v613_v58  ;;  %v431_v7 = vmul.f32 %v427_v1, %v415_v4 }
 0x38c   :  { %v615_v62 = vpop.eup %614 }
 0x38d   :  { %v434_v2 = vmul.f32 %v430_v61, %v418_v60  ;;  %v428_v3 = vadd.f32 1.0, %v615_v62 }
 0x38f   :  { %v438_v5 = vpack.c.bf16 %v434_v2, %v433_v0  ;;  %v432_v6 = vmul.f32 %v428_v3, %v416_v63 }
 0x391   :  { %571 = vmatpush3.bf16.msra.mxu1 %v438_v5  ;;  %v437_v8 = vpack.c.bf16 %v432_v6, %v431_v7 }
 0x392   :  { %572 = vmatprep.subr.bf16.mxu1 %v643_v55 }
 0x395   :  { %573 = vmatpush3.bf16.msra.mxu1 %v437_v8 }
 0x398   :  { %575 = vmatmul.mubr.msk.bf16.vlgmr.msra.gmra.mxu1 %vm276_vm4, %v599_v9 }
 0x458   :  { %v493_v12 = vpop.f32.mrf.mxu1 }
 0x459   :  { %v494_v14 = vadd.f32 %v493_v12, %v444_v10 }
 0x45a   :  { %v576_v15 = vpop.f32.mrf.mxu1 }
 0x45b   :  { %v506_v16 = vadd.f32 %v501_v13, %v494_v14 }
 0x45c   :  { %v496_v17 = vpop.f32.mrf.mxu1 }
 0x45d   :  { %508 = vst.msk [vmem:[#allocation2] sm:$0xff] %vm276_vm4, %v506_v16  ;;  %v497_v55 = vadd.f32 %v496_v17, %v449_v11 }
 0x45e   :  { %v577_v19 = vpop.f32.mrf.mxu1 }
 0x45f   :  { %v507_v20 = vadd.f32 %v503_v18, %v497_v55 }
 0x461   :  { %509 = vst.msk [vmem:[#allocation2 + $0x8] sm:$0xff] %vm276_vm4, %v507_v20 }
 0x462   :  { %627 = shalt.err (!%p624_p4)
}
 0x463   :  { %s646_s18 = smov 128   ;;  %s647_s19 = smov 8  }
 0x464   :  { %521 = dma.vmem_to_hbm [thread:$0]  %s516_s17, 256, %s816_s11, [#allocation3], %s646_s18, %s646_s18, %s647_s19  }
 0x465   :  { %636 = dma.done.wait [#allocation3], 256  }
 0x466   :  { %637 = vsyncadd [#allocation3], 4294967040 }
 0x467   :  { %525 = vsyncpa [#allocation3], 1 }

</bundles_post_ra>
